<compile_context>
chip_gen: v6e
topology: v6e:2x2x1
jax: 0.10.0
libtpu: 0.0.40
codegen_flags: <defaults>
</compile_context>

<pallas_src>
import functools

import numpy as np
import jax
import jax.numpy as jnp
from jax.experimental import pallas as pl
from jax.experimental.pallas import tpu as pltpu

_EPS = 1e-6  # torch.nn.PairwiseDistance(p=2) default eps


def _triplet_kernel(a_ref, p_ref, n_ref, out_ref, acc_ref, *,
                    margin, n_rows, tile_b, tiles_per_core, needs_mask):
    c = pl.program_id(0)   # TensorCore split ("parallel")
    i = pl.program_id(1)   # row-tile index within this core ("arbitrary")

    @pl.when(i == 0)
    def _():
        acc_ref[...] = jnp.zeros_like(acc_ref)

    a = a_ref[...].astype(jnp.float32)   # (tile_b, D), cast is free VPU work
    p = p_ref[...].astype(jnp.float32)
    n = n_ref[...].astype(jnp.float32)

    dp = (a - p) + jnp.float32(_EPS)
    dn = (a - n) + jnp.float32(_EPS)

    pos = jnp.sqrt(jnp.sum(dp * dp, axis=1, keepdims=True))   # (tile_b, 1)
    neg = jnp.sqrt(jnp.sum(dn * dn, axis=1, keepdims=True))

    hinge = jnp.maximum(jnp.float32(margin) + pos - neg, jnp.float32(0.0))

    if needs_mask:
        # Rows beyond the real batch (partial last block, or a clamped
        # duplicate block on the second core) may hold garbage; select it away.
        lin = c * tiles_per_core + i
        row_ids = lin * tile_b + jax.lax.broadcasted_iota(
            jnp.int32, hinge.shape, 0)
        hinge = jnp.where(row_ids < n_rows, hinge, jnp.float32(0.0))

    # Lane-dense accumulation: broadcast-add the per-step scalar into a full
    # (8,128) scratch vreg (every element holds the running partial sum).
    acc_ref[...] = acc_ref[...] + jnp.sum(hinge)

    @pl.when(i == pl.num_programs(1) - 1)
    def _():
        out_ref[...] = jnp.reshape(acc_ref[...], out_ref.shape)


def triplet_loss_pallas(anchor, positive, negative, margin=0.0):
    """Triplet loss: mean(max(margin + ||a-p+eps|| - ||a-n+eps||, 0))."""
    assert anchor.shape == positive.shape == negative.shape
    assert anchor.ndim == 2
    b, d = anchor.shape

    itemsize = jnp.dtype(anchor.dtype).itemsize
    sub = max(8, 32 // itemsize)          # min sublane tile: f32->8, bf16->16, i8->32

    # Row tile sized so one (tile_b, d) input tile is ~2 MiB: large enough to
    # amortize the ~0.35us per-grid-step overhead, small enough that
    # 3 inputs x 2 pipeline buffers + f32 temporaries fit the VMEM limit below.
    target_bytes = 2 << 20
    max_rows = max(sub, (target_bytes // max(1, d * itemsize)) // sub * sub)
    tile_b = min(max_rows, ((b + sub - 1) // sub) * sub)

    num_tiles = (b + tile_b - 1) // tile_b      # row blocks overall
    tpc = (num_tiles + 1) // 2                  # row blocks per TensorCore
    needs_mask = (2 * tpc * tile_b) != b

    def in_map(c, i):
        # Clamp so a core never DMAs a block starting past the array; the
        # duplicated block is fully masked out inside the kernel.
        return (jnp.minimum(c * tpc + i, num_tiles - 1), 0)

    in_spec = pl.BlockSpec((tile_b, d), in_map)

    kernel = functools.partial(
        _triplet_kernel, margin=float(margin), n_rows=b, tile_b=tile_b,
        tiles_per_core=tpc, needs_mask=needs_mask)

    out = pl.pallas_call(
        kernel,
        out_shape=jax.ShapeDtypeStruct((2, 8, 128), jnp.float32),
        grid=(2, tpc),
        in_specs=[in_spec, in_spec, in_spec],
        out_specs=pl.BlockSpec((1, 8, 128), lambda c, i: (c, 0, 0)),
        scratch_shapes=[pltpu.VMEM((8, 128), jnp.float32)],
        compiler_params=pltpu.CompilerParams(
            dimension_semantics=("parallel", "arbitrary"),
            vmem_limit_bytes=48 * 1024 * 1024),
    )(anchor, positive, negative)

    # Per-core partial sums live at [:, 0, 0]; combine + 1/B scale here.
    return jnp.sum(out[:, 0, 0]) * (1.0 / b)


def _triplet_reference(a, p, n, margin=0.0, eps=_EPS):
    a = a.astype(np.float64)
    p = p.astype(np.float64)
    n = n.astype(np.float64)
    pos = np.sqrt(np.sum((a - p + eps) ** 2, axis=1))
    neg = np.sqrt(np.sum((a - n + eps) ** 2, axis=1))
    hinge = np.maximum(margin + pos - neg, 0.0)
    return np.float32(hinge.mean())


if __name__ == "__main__":
    key = jax.random.PRNGKey(0)
    ka, kp, kn = jax.random.split(key, 3)

    B, D = 16, 32
    anchor = jax.random.normal(ka, (B, D), jnp.float32)
    positive = jax.random.normal(kp, (B, D), jnp.float32)
    negative = jax.random.normal(kn, (B, D), jnp.float32)
    margin = 1.0  # exercises both the clamped and un-clamped branch

    out = triplet_loss_pallas(anchor, positive, negative, margin=margin)
    out = jax.block_until_ready(out)

    ref = _triplet_reference(np.asarray(anchor), np.asarray(positive),
                             np.asarray(negative), margin)
    if not np.allclose(np.asarray(out), ref, rtol=1e-5, atol=1e-6):
        raise AssertionError(f"mismatch: kernel={np.asarray(out)} ref={ref}")

    print("KERNEL_OK")
</pallas_src>

<mosaic_0001>
module attributes {stable_mosaic.version = 11 : i64} {
  func.func @_triplet_kernel(%arg0: i32, %arg1: i32, %arg2: memref<16x32xf32, #tpu.memory_space<vmem>>, %arg3: memref<16x32xf32, #tpu.memory_space<vmem>>, %arg4: memref<16x32xf32, #tpu.memory_space<vmem>>, %arg5: memref<1x8x128xf32, #tpu.memory_space<vmem>>, %arg6: memref<8x128xf32, #tpu.memory_space<vmem>>) attributes {dimension_semantics = [#tpu.dimension_semantics<parallel>, #tpu.dimension_semantics<arbitrary>], iteration_bounds = array<i64: 2, 1>, scalar_prefetch = 0 : i64, scratch_operands = 1 : i64, tpu.core_type = #tpu.core_type<tc>, window_params = [{transform_indices = @transform_0, window_bounds = array<i64: 16, 32>}, {transform_indices = @transform_1, window_bounds = array<i64: 16, 32>}, {transform_indices = @transform_2, window_bounds = array<i64: 16, 32>}, {transform_indices = @transform_3, window_bounds = array<i64: 1, 8, 128>}]} {
    %c0_i32 = arith.constant 0 : i32
    %0 = arith.cmpi eq, %arg1, %c0_i32 : i32
    %1 = arith.extui %0 : i1 to i32
    %c0_i32_0 = arith.constant 0 : i32
    %2 = arith.cmpi ne, %1, %c0_i32_0 : i32
    scf.if %2 {
      %cst_20 = arith.constant 0.000000e+00 : f32
      %46 = vector.broadcast %cst_20 : f32 to vector<8x128xf32>
      %c0_21 = arith.constant 0 : index
      %c0_22 = arith.constant 0 : index
      %47 = vector.load %arg6[%c0_21, %c0_22] : memref<8x128xf32, #tpu.memory_space<vmem>>, vector<8x128xf32>
      tpu.vector_store %arg6[%c0_21, %c0_22], %46 {strides = array<i32>} : memref<8x128xf32, #tpu.memory_space<vmem>>, vector<8x128xf32>,
    } else {
    }
    %c0 = arith.constant 0 : index
    %c0_1 = arith.constant 0 : index
    %3 = vector.load %arg2[%c0, %c0_1] : memref<16x32xf32, #tpu.memory_space<vmem>>, vector<16x32xf32>
    %c0_2 = arith.constant 0 : index
    %c0_3 = arith.constant 0 : index
    %4 = vector.load %arg3[%c0_2, %c0_3] : memref<16x32xf32, #tpu.memory_space<vmem>>, vector<16x32xf32>
    %c0_4 = arith.constant 0 : index
    %c0_5 = arith.constant 0 : index
    %5 = vector.load %arg4[%c0_4, %c0_5] : memref<16x32xf32, #tpu.memory_space<vmem>>, vector<16x32xf32>
    %6 = arith.subf %3, %4 : vector<16x32xf32>
    %cst = arith.constant 9.99999997E-7 : f32
    %7 = vector.broadcast %cst : f32 to vector<16x32xf32>
    %8 = arith.addf %6, %7 : vector<16x32xf32>
    %9 = arith.subf %3, %5 : vector<16x32xf32>
    %cst_6 = arith.constant 9.99999997E-7 : f32
    %10 = vector.broadcast %cst_6 : f32 to vector<16x32xf32>
    %11 = arith.addf %9, %10 : vector<16x32xf32>
    %12 = arith.mulf %8, %8 : vector<16x32xf32>
    %cst_7 = arith.constant dense<0.000000e+00> : vector<16xf32>
    %13 = vector.multi_reduction <add>, %12, %cst_7 [1] : vector<16x32xf32> to vector<16xf32>
    %14 = vector.shape_cast %13 : vector<16xf32> to vector<16x1xf32>
    %15 = math.sqrt %14 : vector<16x1xf32>
    %16 = arith.mulf %11, %11 : vector<16x32xf32>
    %cst_8 = arith.constant dense<0.000000e+00> : vector<16xf32>
    %17 = vector.multi_reduction <add>, %16, %cst_8 [1] : vector<16x32xf32> to vector<16xf32>
    %18 = vector.shape_cast %17 : vector<16xf32> to vector<16x1xf32>
    %19 = math.sqrt %18 : vector<16x1xf32>
    %cst_9 = arith.constant 1.000000e+00 : f32
    %20 = vector.broadcast %cst_9 : f32 to vector<16x1xf32>
    %21 = arith.addf %20, %15 : vector<16x1xf32>
    %22 = arith.subf %21, %19 : vector<16x1xf32>
    %cst_10 = arith.constant 0.000000e+00 : f32
    %23 = vector.broadcast %cst_10 : f32 to vector<16x1xf32>
    %24 = arith.maximumf %22, %23 : vector<16x1xf32>
    %c1_i32 = arith.constant 1 : i32
    %25 = arith.muli %arg0, %c1_i32 : i32
    %26 = arith.addi %25, %arg1 : i32
    %c16_i32 = arith.constant 16 : i32
    %27 = arith.muli %26, %c16_i32 : i32
    %28 = tpu.iota {dimensions = array<i32: 0>} : vector<16x1xi32>
    %29 = vector.broadcast %27 : i32 to vector<16x1xi32>
    %30 = arith.addi %29, %28 : vector<16x1xi32>
    %c16_i32_11 = arith.constant 16 : i32
    %31 = vector.broadcast %c16_i32_11 : i32 to vector<16x1xi32>
    %32 = arith.cmpi slt, %30, %31 : vector<16x1xi32>
    %cst_12 = arith.constant 0.000000e+00 : f32
    %33 = vector.broadcast %cst_12 : f32 to vector<16x1xf32>
    %34 = arith.select %32, %24, %33 : vector<16x1xi1>, vector<16x1xf32>
    %c0_13 = arith.constant 0 : index
    %c0_14 = arith.constant 0 : index
    %35 = vector.load %arg6[%c0_13, %c0_14] : memref<8x128xf32, #tpu.memory_space<vmem>>, vector<8x128xf32>
    %36 = vector.shape_cast %34 : vector<16x1xf32> to vector<1x16x1xf32>
    %cst_15 = arith.constant dense<0.000000e+00> : vector<1xf32>
    %37 = vector.multi_reduction <add>, %36, %cst_15 [1, 2] : vector<1x16x1xf32> to vector<1xf32>
    %38 = vector.shape_cast %37 : vector<1xf32> to vector<1x1x1xf32>
    %39 = vector.extract %38[0, 0, 0] : f32 from vector<1x1x1xf32>
    %40 = vector.broadcast %39 : f32 to vector<8x128xf32>
    %41 = arith.addf %35, %40 : vector<8x128xf32>
    %c0_16 = arith.constant 0 : index
    %c0_17 = arith.constant 0 : index
    %42 = vector.load %arg6[%c0_16, %c0_17] : memref<8x128xf32, #tpu.memory_space<vmem>>, vector<8x128xf32>
    tpu.vector_store %arg6[%c0_16, %c0_17], %41 {strides = array<i32>} : memref<8x128xf32, #tpu.memory_space<vmem>>, vector<8x128xf32>,
    %c0_i32_18 = arith.constant 0 : i32
    %43 = arith.cmpi eq, %arg1, %c0_i32_18 : i32
    %44 = arith.extui %43 : i1 to i32
    %c0_i32_19 = arith.constant 0 : i32
    %45 = arith.cmpi ne, %44, %c0_i32_19 : i32
    scf.if %45 {
      %c0_20 = arith.constant 0 : index
      %c0_21 = arith.constant 0 : index
      %46 = vector.load %arg6[%c0_20, %c0_21] : memref<8x128xf32, #tpu.memory_space<vmem>>, vector<8x128xf32>
      %47 = vector.shape_cast %46 : vector<8x128xf32> to vector<1x8x128xf32>
      %c0_22 = arith.constant 0 : index
      %c0_23 = arith.constant 0 : index
      %c0_24 = arith.constant 0 : index
      %48 = vector.load %arg5[%c0_22, %c0_23, %c0_24] : memref<1x8x128xf32, #tpu.memory_space<vmem>>, vector<1x8x128xf32>
      tpu.vector_store %arg5[%c0_22, %c0_23, %c0_24], %47 {strides = array<i32>} : memref<1x8x128xf32, #tpu.memory_space<vmem>>, vector<1x8x128xf32>,
    } else {
    }
    return
  }
  func.func @transform_0(%arg0: i32, %arg1: i32) -> (i32, i32) {
    %c1_i32 = arith.constant 1 : i32
    %0 = arith.muli %arg0, %c1_i32 : i32
    %1 = arith.addi %0, %arg1 : i32
    %c0_i32 = arith.constant 0 : i32
    %2 = arith.minsi %1, %c0_i32 : i32
    %c0_i32_0 = arith.constant 0 : i32
    %c0_i32_1 = arith.constant 0 : i32
    return %2, %c0_i32_0 : i32, i32
  }
  func.func @transform_1(%arg0: i32, %arg1: i32) -> (i32, i32) {
    %c1_i32 = arith.constant 1 : i32
    %0 = arith.muli %arg0, %c1_i32 : i32
    %1 = arith.addi %0, %arg1 : i32
    %c0_i32 = arith.constant 0 : i32
    %2 = arith.minsi %1, %c0_i32 : i32
    %c0_i32_0 = arith.constant 0 : i32
    %c0_i32_1 = arith.constant 0 : i32
    return %2, %c0_i32_0 : i32, i32
  }
  func.func @transform_2(%arg0: i32, %arg1: i32) -> (i32, i32) {
    %c1_i32 = arith.constant 1 : i32
    %0 = arith.muli %arg0, %c1_i32 : i32
    %1 = arith.addi %0, %arg1 : i32
    %c0_i32 = arith.constant 0 : i32
    %2 = arith.minsi %1, %c0_i32 : i32
    %c0_i32_0 = arith.constant 0 : i32
    %c0_i32_1 = arith.constant 0 : i32
    return %2, %c0_i32_0 : i32, i32
  }
  func.func @transform_3(%arg0: i32, %arg1: i32) -> (i32, i32, i32) {
    %c0_i32 = arith.constant 0 : i32
    %c0_i32_0 = arith.constant 0 : i32
    %c0_i32_1 = arith.constant 0 : i32
    return %arg0, %c0_i32, %c0_i32_0 : i32, i32, i32
  }
}

</mosaic_0001>

<bundles_post_ra>
// kernel: tpu_custom_call.1
= control target key start
LH: loop header
LB: loop body
LE: loop exit
PB: predicated region body
PF: predicated region fallthrough
CT: control target
= control target key end

     0   :  { %8 = vsyncpa [#allocation4], 0  ;;  %s1128_s0 = inlined_call_operand.hbm [shape: f32[16,32], index: 0, kind: input, shape index: {}]   ;;  %s1129_s1 = inlined_call_operand.hbm [shape: f32[16,32], index: 1, kind: input, shape index: {}]   ;;  %s1130_s2 = inlined_call_operand.hbm [shape: f32[16,32], index: 2, kind: input, shape index: {}]   ;;  %s1131_s3 = inlined_call_operand.hbm [shape: f32[2,8,128], index: 3, kind: output, shape index: {}]  }
   0x1   :  { %10 = vsyncpa [#allocation4 + $0x1], 0 }
   0x2   :  { %11 = vsyncpa [#allocation7], 0 }
   0x3   :  { %13 = vsyncpa [#allocation7 + $0x1], 0 }
   0x4   :  { %14 = vsyncpa [#allocation5], 0 }
   0x5   :  { %16 = vsyncpa [#allocation5 + $0x1], 0  ;;  %s907_s12 = smov 0   ;;  %s909_s13 = smov 0  }
   0x6   :  { %s911_s14 = smov 0   ;;  %s913_s15 = smov 0  }
   0x7   :  { %s915_s16 = smov 0   ;;  %s917_s17 = smov 0  }
   0x8   :  { %s919_s18 = smov 0   ;;  %s921_s19 = smov 0  }
   0x9 LB: > { %1136 = sst [smem:[#allocation13_spill]] %s875_s18  ;;  %s946_s20 = sadd.s32 4294967295, %s879_s19   ;;  %s879_s19 = sphi %s921_s19, %s22_s19   ;;  %s875_s18 = sphi %s919_s18, %s1152_s18   ;;  %s871_s17 = sphi %s917_s17, %s1151_s17   ;;  %s867_s16 = sphi %s915_s16, %s1118_s16   ;;  %s863_s15 = sphi %s913_s15, %s1156_s15   ;;  %s859_s14 = sphi %s911_s14, %s1155_s14   ;;  %s855_s13 = sphi %s909_s13, %s1154_s13   ;;  %s851_s12 = sphi %s907_s12, %s1153_s12  }
   0xa   : > { %s557_s21 = sadd.s32 4294967294, %s879_s19   ;;  %s34_s22 = sadd.s32 1, %s875_s18 }
   0xb   : > { %p36_p0 = scmp.ge.s32.totalorder %s34_s22, 2  ;;  %p848_p1 = scmp.ne.s32.totalorder %s867_s16, 0 }
   0xc   : > { %p55_p2 = scmp.eq.s32.totalorder %s879_s19, 0  ;;  %p60_p3 = scmp.ne.s32.totalorder %s867_s16, %s863_s15 }
   0xd   : > { %s1158_s22 = smov (%p36_p0, %s34_s22), 0  ;;  %p61_p5 = scmp.eq.s32.totalorder %s946_s20, 0 }
   0xe   : > { %1137 = sst [smem:[#allocation14_spill]] %s1158_s22  ;;  %p955_p4 = por %p848_p1, %p55_p2 }
   0xf   : > { %p960_p6 = por %p61_p5, %p60_p3  ;;  %s134_s25 = ssub.s32 %s875_s18, %s1158_s22 }
  0x10   : > { %p135_p7 = scmp.eq.s32.totalorder %s134_s25, 0  ;;  %s137_s26 = sadd.s32 1, %s859_s14 }
  0x11   : > { %s1139_s24 = scalar_select %p960_p6, 1, 0 }
  0x12   : > { %s968_s27 = scalar_select %p135_p7, %s859_s14, %s137_s26  }
  0x13   : > { %p147_p8 = scmp.ne.s32.totalorder %s859_s14, %s855_s13  ;;  %p148_p9 = scmp.eq.s32.totalorder %s946_s20, 1 }
  0x14   : > { %p153_p10 = scmp.ne.s32.totalorder %s855_s13, %s851_s12  ;;  %p154_p11 = scmp.eq.s32.totalorder %s557_s21, 1 }
  0x15   : > { %p975_p12 = por %p148_p9, %p147_p8  ;;  %p606_p1 = scmp.lt.s32.totalorder %s879_s19, 2 }
  0x16   : > { %p980_p0 = por %p154_p11, %p153_p10  ;;  %s198_s4 = sand.u32 1, %s879_s19  }
  0x17   : > { %s1140_s28 = scalar_select %p975_p12, 1, 0 }
  0x18   : > { %s1141_s29 = scalar_select %p980_p0, 1, 0 }
  0x19   : > { %p987_p2 = pnand %p606_p1, %p955_p4  ;;  %s881_s5 = smov [#allocation6]  }
  0x1a   : > { %s212_s6 = sshll.u32 %s881_s5, 4  ;;  %s993_s7 = scalar_lea.sflag [#allocation7], %s198_s4  ;;  %s213_s6 = int_to_ptr.vmem [resolvable:$true] %s212_s6 }
  0x1b   : > { %s690_s10 = scalar_lea.hbm %s1129_s1, 256  ;;  %p1003_p4 = pneg %p987_p2 }
  0x1c   : > { %p691_p5 = scmp.ne.s32.totalorder %s1129_s1, %s690_s10  ;;  %p697_p9 = scmp.lt.s32.totalorder %s690_s10, %s690_s10 }
  0x1e   : > { %p693_p7 = pnand %p1003_p4, %p691_p5 }
  0x20   : > { %p694_p8 = pneg %p693_p7 }
  0x22   : > { %p699_p10 = pnand %p697_p9, %p694_p8 }
  0x24   : > { %702 = shalt.err (!%p699_p10)
}
  0x25   : > { %s703_s23 = scalar_lea.vmem %s213_s6, 256  ;;  %s710_s25 = scalar_lea.vmem %s213_s6, 512 }
  0x26   : > { %p704_p11 = scmp.ne.s32.totalorder %s213_s6, %s703_s23  ;;  %p711_p3 = scmp.lt.s32.totalorder %s213_s6, %s213_s6 }
  0x27   : > { %p712_p0 = scmp.lt.s32.totalorder %s710_s25, %s703_s23 }
  0x28   : > { %p706_p1 = pnand %p704_p11, %p1003_p4 }
  0x29   : > { %p713_p12 = por %p712_p0, %p711_p3 }
  0x2a   : > { %p707_p13 = pneg %p706_p1 }
  0x2c   : > { %p714_p6 = pnand %p713_p12, %p707_p13 }
  0x2e   : > { %717 = shalt.err (!%p714_p6)
}
  0x2f   : > { %s882_s26 = smov 128   ;;  %s883_s4 = smov 8  }
  0x30   : > { %598 = dma.hbm_to_vmem [thread:$0]  (!%p987_p2), %s1129_s1, 256, %s213_s6, %s993_s7, %s882_s26, %s882_s26, %s883_s4  }
  0x31   : > { %p244_p5 = scmp.lt.s32.totalorder %s879_s19, 3  ;;  %p1144_p7 = scmp.ge.s32.totalorder %s879_s19, 1 }
  0x32   : > { %s884_s10 = smov [#allocation3]   ;;  %s718_s25 = scalar_lea.hbm %s1128_s0, 256 }
  0x33   : > { %p1023_p0 = pnand %p1144_p7, %p244_p5  ;;  %s188_s11 = sshll.u32 %s884_s10, 4  ;;  %s189_s11 = int_to_ptr.vmem [resolvable:$true] %s188_s11 }
  0x34   : > { %p719_p6 = scmp.ne.s32.totalorder %s1128_s0, %s718_s25  ;;  %p725_p3 = scmp.lt.s32.totalorder %s718_s25, %s718_s25 }
  0x35   : > { %s1145_s9 = scalar_select %p1023_p0, 1, 0 }
  0x36   : > { %p721_p12 = pnand %p719_p6, %p1003_p4 }
  0x38   : > { %p722_p13 = pneg %p721_p12 }
  0x3a   : > { %p727_p8 = pnand %p725_p3, %p722_p13 }
  0x3c   : > { %730 = shalt.err (!%p727_p8)
}
  0x3d   : > { %s731_s6 = scalar_lea.vmem %s189_s11, 256  ;;  %s738_s5 = scalar_lea.vmem %s189_s11, 512 }
  0x3e   : > { %p732_p9 = scmp.ne.s32.totalorder %s189_s11, %s731_s6  ;;  %p739_p1 = scmp.lt.s32.totalorder %s189_s11, %s189_s11 }
  0x3f   : > { %p740_p5 = scmp.lt.s32.totalorder %s738_s5, %s731_s6 }
  0x40   : > { %p734_p10 = pnand %p732_p9, %p1003_p4 }
  0x41   : > { %p741_p7 = por %p740_p5, %p739_p1 }
  0x42   : > { %p735_p11 = pneg %p734_p10 }
  0x44   : > { %p742_p0 = pnand %p741_p7, %p735_p11 }
  0x46   : > { %745 = shalt.err (!%p742_p0)
}
  0x47   : > { %595 = dma.hbm_to_vmem [thread:$0]  (!%p987_p2), %s1128_s0, 256, %s189_s11, [#allocation4], %s882_s26, %s882_s26, %s883_s4  }
  0x48   : > { %s885_s8 = smov [#allocation8]   ;;  %s746_s25 = scalar_lea.hbm %s1130_s2, 256 }
  0x49   : > { %s236_s10 = sshll.u32 %s885_s8, 4  ;;  %p747_p0 = scmp.ne.s32.totalorder %s1130_s2, %s746_s25  ;;  %s237_s10 = int_to_ptr.vmem [resolvable:$true] %s236_s10 }
  0x4a   : > { %p753_p13 = scmp.lt.s32.totalorder %s746_s25, %s746_s25 }
  0x4b   : > { %p749_p6 = pnand %p747_p0, %p1003_p4 }
  0x4d   : > { %p750_p12 = pneg %p749_p6 }
  0x4f   : > { %p755_p3 = pnand %p753_p13, %p750_p12 }
  0x51   : > { %758 = shalt.err (!%p755_p3)
}
  0x52   : > { %s759_s18 = scalar_lea.vmem %s237_s10, 256  ;;  %s766_s11 = scalar_lea.vmem %s237_s10, 512 }
  0x53   : > { %p760_p8 = scmp.ne.s32.totalorder %s237_s10, %s759_s18  ;;  %p767_p11 = scmp.lt.s32.totalorder %s237_s10, %s237_s10 }
  0x54   : > { %p768_p1 = scmp.lt.s32.totalorder %s766_s11, %s759_s18 }
  0x55   : > { %p762_p9 = pnand %p760_p8, %p1003_p4 }
  0x56   : > { %p769_p5 = por %p768_p1, %p767_p11 }
  0x57   : > { %p763_p10 = pneg %p762_p9 }
  0x59   : > { %p770_p7 = pnand %p769_p5, %p763_p10 }
  0x5b   : > { %773 = shalt.err (!%p770_p7)
}
  0x5c   : > { %601 = dma.hbm_to_vmem [thread:$0]  (!%p987_p2), %s1130_s2, 256, %s237_s10, %s993_s7, %s882_s26, %s882_s26, %s883_s4  }
  0x5d   : > { %p1146_p0 = scmp.ne.s32.totalorder %s1145_s9, 0 }
  0x5e   : > { %s250_s21 = sand.u32 (!%p1146_p0), 1, %s867_s16   ;;  %p1147_p4 = scmp.ne.s32.totalorder (!%p1146_p0), %s1139_s24, 0 }
  0x5f   : > { %248 = sbr.rel (%p1146_p0) target bundleno = 498 (0x1f2), region = 32  ;;  %s570_s15 = sshll.u32 (!%p1146_p0), %s250_s21, 4 }
  0x60   : > { %s251_s23 = scalar_lea.sflag (!%p1146_p0), [#allocation4], %s250_s21  ;;  %s254_s25 = scalar_lea.vmem (!%p1146_p0), [#allocation3], %s570_s15 }
  0x64   : > { %837 = dma.done.wait (%p1147_p4), %s251_s23, 256  }
  0x65   : > { %839 = vsyncadd (%p1147_p4), %s251_s23, 4294967040  ;;  %s259_s30 = sand.u32 1, %s946_s20   ;;  %s263_s5 = scalar_lea.vmem [#allocation6], %s570_s15 }
  0x66   : > { %s260_s6 = scalar_lea.sflag [#allocation7], %s259_s30 }
  0x67   : > { %841 = dma.done.wait (%p1147_p4), %s260_s6, 512  }
  0x68   : > { %843 = vsyncadd (%p1147_p4), %s260_s6, 4294966784  ;;  %v322_v0 = vld [vmem:[%s254_s25] sm:$0xff]  ;;  %s272_s7 = scalar_lea.vmem [#allocation8], %s570_s15  ;;  %v323_v5 = vld [vmem:[%s254_s25 + $0x8] sm:$0xff]  ;;  %vm338_vm0 = vcmask 261120   ;;  %v389_v26 = vlaneseq  ;;  %s574_s20 = sshll.u32 %s871_s17, 4 }
  0x69   : > { %v326_v1 = vld [vmem:[%s272_s7] sm:$0xff]  ;;  %v327_v6 = vld [vmem:[%s272_s7 + $0x8] sm:$0xff]  ;;  %v392_v33 = vstv %s574_s20  ;;  %vm400_vm11 = vcmask 7168   ;;  %s302_s24 = sand.u32 1, %s855_s13   ;;  %s576_s10 = sshll.u32 %s871_s17, 7 }
  0x6a   : > { %v324_v2 = vld [vmem:[%s263_s5] sm:$0xff]  ;;  %v332_v3 = vsub.f32 %v322_v0, %v326_v1  ;;  %v325_v7 = vld [vmem:[%s263_s5 + $0x8] sm:$0xff]  ;;  %v333_v8 = vsub.f32 %v323_v5, %v327_v6  ;;  %v390_v31 = vshrl.u32 %v389_v26, 7  ;;  %s573_s26 = sshll.u32 %s302_s24, 3  ;;  %s433_s8 = scalar_lea.hbm %s1131_s3, %s576_s10 }
  0x6b   : > { %v328_v4 = vsub.f32 %v322_v0, %v324_v2  ;;  %v329_v9 = vsub.f32 %v323_v5, %v325_v7  ;;  %s304_s4 = scalar_lea.vmem [#allocation9], %s573_s26  ;;  %s422_s21 = scalar_lea.sflag [#allocation5], %s302_s24 }
  0x6c   : > { %v334_v10 = vadd.f32 1e-06, %v332_v3  ;;  %v335_v12 = vadd.f32 1e-06, %v333_v8  ;;  %v391_v41 = vadd.s32 8, %v390_v31  ;;  %v393_v44 = vadd.s32 %v392_v33, %v390_v31  ;;  %s435_s9 = sshll.u32 %s304_s4, 4  ;;  %s1079_s9 = int_to_ptr.vmem [resolvable:$true] %s435_s9 }
  0x6d   : > { %v330_v11 = vadd.f32 1e-06, %v328_v4  ;;  %v331_v13 = vadd.f32 1e-06, %v329_v9  ;;  %s774_s15 = scalar_lea.vmem %s1079_s9, 128  ;;  %p1148_p6 = scmp.ne.s32.totalorder %s1140_s28, 0 }
  0x6e   : > { %v359_v14 = vmul.f32 %v334_v10, %v334_v10  ;;  %v360_v16 = vmul.f32 %v335_v12, %v335_v12  ;;  %v394_v52 = vadd.s32 %v392_v33, %v391_v41  ;;  %vm395_vm9 = vcmp.lt.s32.totalorder %v393_v44, 16  ;;  %p775_p2 = scmp.ne.s32.totalorder %s1079_s9, %s774_s15  ;;  %s886_s23 = smov [#allocation9]  }
  0x6f   : > { %v336_v15 = vmul.f32 %v330_v11, %v330_v11  ;;  %v337_v17 = vmul.f32 %v331_v13, %v331_v13  ;;  %s778_s17 = sshll.u32 %s886_s23, 4  ;;  %s779_s17 = int_to_ptr.vmem [resolvable:$false] %s778_s17 }
  0x70   : > { %v361_v18 = vsel %vm338_vm0, %v359_v14, 0.0  ;;  %v364_v20 = vsel %vm338_vm0, %v360_v16, 0.0  ;;  %vm396_vm10 = vcmp.lt.s32.totalorder %v394_v52, 16  ;;  %p776_p12 = pnand %p775_p2, %p1148_p6  ;;  %s780_s25 = scalar_lea.vmem %s779_s17, 256 }
  0x71   : > { %v339_v19 = vsel %vm338_vm0, %v336_v15, 0.0  ;;  %362 = vadd.xlane.f32.xlu1 %v361_v18  ;;  %v342_v21 = vsel %vm338_vm0, %v337_v17, 0.0  ;;  %p781_p3 = scmp.lt.s32.totalorder %s1079_s9, %s779_s17  ;;  %p782_p8 = scmp.lt.s32.totalorder %s780_s25, %s774_s15 }
  0x72   : > { %340 = vadd.xlane.f32.xlu0 %v339_v19  ;;  %p777_p13 = pneg %p776_p12 }
  0x73   : > { %p783_p9 = por %p782_p8, %p781_p3 }
  0x75   : > { %365 = vadd.xlane.f32.xlu1 %v364_v20  ;;  %p784_p10 = pnand %p783_p9, %p777_p13 }
  0x76   : > { %343 = vadd.xlane.f32.xlu0 %v342_v21 }
  0xfa   : > { %v363_v22 = vpop.xlane.xlu1 %362 }
  0xfb   : > { %v341_v23 = vpop.xlane.xlu0 %340  ;;  %682 = vrsqrt.f32 %v363_v22  ;;  %vm369_vm2 = vcmp.eq.f32.partialorder %v363_v22, inf  ;;  %v372_v40 = vand.u32 2147483648, %v363_v22  ;;  %vm371_vm4 = vcmp.eq.f32.partialorder %v363_v22, 0.0 }
  0xfc   : > { %684 = vrsqrt.f32 %v341_v23  ;;  %vm347_vm1 = vcmp.eq.f32.partialorder %v341_v23, inf  ;;  %v350_v32 = vand.u32 2147483648, %v341_v23  ;;  %vm349_vm3 = vcmp.eq.f32.partialorder %v341_v23, 0.0 }
  0xfe   : > { %v366_v24 = vpop.xlane.xlu1 %365 }
  0xff   : > { %v344_v25 = vpop.xlane.xlu0 %343  ;;  %686 = vrsqrt.f32 %v366_v24  ;;  %vm376_vm5 = vcmp.eq.f32.partialorder %v366_v24, inf  ;;  %v379_v50 = vand.u32 2147483648, %v366_v24  ;;  %vm378_vm8 = vcmp.eq.f32.partialorder %v366_v24, 0.0 }
 0x100   : > { %688 = vrsqrt.f32 %v344_v25  ;;  %vm354_vm6 = vcmp.eq.f32.partialorder %v344_v25, inf  ;;  %v357_v45 = vand.u32 2147483648, %v344_v25  ;;  %vm356_vm7 = vcmp.eq.f32.partialorder %v344_v25, 0.0 }
 0x108   : > { %v683_v27 = vpop.eup %682 }
 0x109   : > { %v685_v28 = vpop.eup %684  ;;  %v368_v29 = vmul.f32 %v683_v27, %v363_v22 }
 0x10a   : > { %v346_v30 = vmul.f32 %v685_v28, %v341_v23 }
 0x10b   : > { %v370_v36 = vsel %vm369_vm2, %v363_v22, %v368_v29 }
 0x10c   : > { %v687_v34 = vpop.eup %686  ;;  %v348_v35 = vsel %vm347_vm1, %v341_v23, %v346_v30  ;;  %v373_v46 = vsel %vm371_vm4, %v372_v40, %v370_v36 }
 0x10d   : > { %v689_v37 = vpop.eup %688  ;;  %v375_v38 = vmul.f32 %v687_v34, %v366_v24  ;;  %v351_v39 = vsel %vm349_vm3, %v350_v32, %v348_v35 }
 0x10e   : > { %v353_v42 = vmul.f32 %v689_v37, %v344_v25  ;;  %v381_v43 = vadd.f32 1.0, %v351_v39 }
 0x10f   : > { %v377_v47 = vsel %vm376_vm5, %v366_v24, %v375_v38 }
 0x110   : > { %v355_v48 = vsel %vm354_vm6, %v344_v25, %v353_v42  ;;  %v383_v49 = vsub.f32 %v381_v43, %v373_v46  ;;  %v380_v55 = vsel %vm378_vm8, %v379_v50, %v377_v47 }
 0x111   : > { %v358_v51 = vsel %vm356_vm7, %v357_v45, %v355_v48 }
 0x112   : > { %v382_v53 = vadd.f32 1.0, %v358_v51  ;;  %v385_v54 = vmax.f32 %v383_v49, 0.0 }
 0x114   : > { %v384_v56 = vsub.f32 %v382_v53, %v380_v55  ;;  %v397_v58 = vsel %vm395_vm9, %v385_v54, 0.0 }
 0x115   : > { %v401_v60 = vsel %vm400_vm11, %v397_v58, 0.0 }
 0x116   : > { %v386_v57 = vmax.f32 %v384_v56, 0.0 }
 0x118   : > { %v398_v59 = vsel %vm396_vm10, %v386_v57, 0.0 }
 0x119   : > { %v402_v61 = vsel %vm400_vm11, %v398_v59, 0.0 }
 0x11a   : > { %v403_v62 = vadd.f32 %v402_v61, %v401_v60 }
 0x11c   : > { %404 = vadd.xlane.f32.xlu0 %v403_v62 }
 0x1a5   : > { %v405_v63 = vpop.xlane.xlu0 %404 }
 0x1a6   : > { %v406_v0 = vrot.slane %v405_v63, 4 }
 0x1a8   : > { %v407_v1 = vadd.f32 %v406_v0, %v405_v63 }
 0x1aa   : > { %v408_v2 = vrot.slane %v407_v1, 2 }
 0x1ac   : > { %v409_v3 = vadd.f32 %v408_v2, %v407_v1 }
 0x1ae   : > { %v410_v4 = vrot.slane %v409_v3, 1 }
 0x1b0   : > { %v411_v5 = vadd.f32 %v410_v4, %v409_v3 }
 0x1b2   : > { %582 = vpush %v411_v5 }
 0x1e3   : > { %s583_s18 = spop %582 }
 0x1e4   : > { %v413_v6 = vstv %s583_s18 }
 0x1e5   : > { %420 = vst [vmem:[%s304_s4] sm:$0xff] %v413_v6 }
 0x1e6   : > { %787 = shalt.err (!%p784_p10)
}
 0x1e7   : > { %s788_s30 = scalar_lea.hbm %s433_s8, 128  ;;  %s792_s7 = scalar_lea.hbm %s1131_s3, 256 }
 0x1e8   : > { %p789_p11 = scmp.ne.s32.totalorder %s433_s8, %s788_s30  ;;  %p793_p7 = scmp.lt.s32.totalorder %s433_s8, %s1131_s3 }
 0x1e9   : > { %p794_p0 = scmp.lt.s32.totalorder %s792_s7, %s788_s30 }
 0x1ea   : > { %p790_p1 = pnand %p789_p11, %p1148_p6 }
 0x1eb   : > { %p795_p4 = por %p794_p0, %p793_p7 }
 0x1ec   : > { %p791_p5 = pneg %p790_p1 }
 0x1ee   : > { %p796_p2 = pnand %p795_p4, %p791_p5 }
 0x1f0   : > { %799 = shalt.err (!%p796_p2)
}
 0x1f1   : > { %590 = dma.vmem_to_hbm [thread:$0]  (%p1148_p6), %s1079_s9, 128, %s433_s8, %s422_s21  }
 0x1f2 PF: > { %s447_s26 = sand.u32 1, %s851_s12   ;;  %p1149_p12 = scmp.ne.s32.totalorder %s1141_s29, 0 }
 0x1f3   : > { %p1150_p13 = scmp.ge.s32.totalorder %s879_s19, 2  ;;  %s448_s4 = scalar_lea.sflag [#allocation5], %s447_s26 }
 0x1f5   : > { %p603_p3 = pnand %p1150_p13, %p1149_p12 }
 0x1f7   : > { %p604_p8 = pneg %p603_p3 }
 0x1f9   : > { %845 = dma.done.wait (%p604_p8), %s448_s4, 128  }
 0x1fa   : > { %847 = vsyncadd (%p604_p8), %s448_s4, 4294967168  ;;  %s22_s19 = sadd.s32 1, %s879_s19   ;;  %s1151_s17 = sld [smem:[#allocation13_spill]] }
 0x1fb   : > { %p19_p9 = scmp.ge.s32.totalorder %s22_s19, 4   ;;  %s1152_s18 = sld [smem:[#allocation14_spill]] }
 0x1fc   : > { %s1153_s12 = smov %s855_s13  ;;  %s1154_s13 = smov %s859_s14 }
 0x1fd   : > { %s1155_s14 = smov %s968_s27  ;;  %s1156_s15 = smov %s867_s16 }
 0x1fe   : > { %s1118_s16 = smov 0   ;;  %21 = sbr.rel (!%p19_p9) target bundleno = 9 (0x9), region = 109 }
 0x203   :  { %453 = vsyncpa [#allocation4], 1 }
 0x204   :  { %455 = vsyncpa [#allocation4 + $0x1], 1 }
 0x205   :  { %456 = vsyncpa [#allocation7], 1 }
 0x206   :  { %458 = vsyncpa [#allocation7 + $0x1], 1 }
 0x207   :  { %459 = vsyncpa [#allocation5], 1 }
 0x208   :  { %461 = vsyncpa [#allocation5 + $0x1], 1 }

</bundles_post_ra>
